<compile_context>
chip_gen: v5e
topology: v5e:2x2
jax: 0.10.0
libtpu: 0.0.40
codegen_flags: <defaults>
</compile_context>

<pallas_src>
import jax
import jax.numpy as jnp
from jax.experimental import pallas as pl
from jax.experimental.pallas import tpu as pltpu


def _fourier_kernel(x_ref, w_ref, o_ref):
    # x_ref: (tm, K), w_ref: (K, tn), o_ref: (tm, tn).
    # Single MXU matmul, f32 accumulate, one lane-dense store.
    o_ref[...] = jnp.dot(
        x_ref[...], w_ref[...], preferred_element_type=jnp.float32
    ).astype(o_ref.dtype)


def fuse_fourier_weights(weight_real, weight_imag, *, compute_dtype=None,
                         lane_multiple=128):
    """Fuse (output_dim, K) real/imag weights -> (K, N2p) [real | imag] operand.

    Columns are zero-padded up to a multiple of `lane_multiple` so the kernel's
    output stores are unmasked. Call this ONCE (outside the training-step jit);
    for traced parameters the transpose+concat would otherwise re-run per step.
    """
    output_dim, k = weight_real.shape
    assert weight_imag.shape == (output_dim, k)
    w = jnp.concatenate([weight_real.T, weight_imag.T], axis=1)  # (K, 2N)
    n2 = 2 * output_dim
    n2p = ((n2 + lane_multiple - 1) // lane_multiple) * lane_multiple
    if n2p != n2:
        w = jnp.pad(w, ((0, 0), (0, n2p - n2)))
    if compute_dtype is not None:
        w = w.astype(compute_dtype)
    return w


def _weight_spec(k, tn, n_tiles):
    index_map = lambda i, j: (0, j)
    if n_tiles == 1 and hasattr(pl, "Buffered"):
        # Resident weight: index_map is constant, so a single buffer suffices
        # (halves its VMEM footprint). Fall back cleanly if pipeline_mode is
        # unavailable in this Pallas version.
        try:
            return pl.BlockSpec((k, tn), index_map, pipeline_mode=pl.Buffered(1))
        except TypeError:
            pass
    return pl.BlockSpec((k, tn), index_map)


def nonparametric_fourier_layer_fused(x, w_cat, output_dim, *, tile_m=1024,
                                      tile_n=512,
                                      weight_resident_bytes=16 << 20,
                                      compute_dtype=None, out_dtype=None):
    """x: (batch, seq, K); w_cat: pre-fused (K, N2p) from fuse_fourier_weights.

    Returns (batch, seq, 2*output_dim) = [real | imag], matching the PyTorch
    forward.
    """
    batch, seq, input_dim = x.shape
    k, n2p = w_cat.shape
    assert k == input_dim
    n2 = 2 * output_dim
    assert n2p >= n2 and n2p % 128 == 0

    m = batch * seq
    x2d = x.reshape(m, input_dim)
    if compute_dtype is not None:
        if x2d.dtype != compute_dtype:
            x2d = x2d.astype(compute_dtype)
        if w_cat.dtype != compute_dtype:
            # Prefer pre-fusing with compute_dtype; this cast is a fallback.
            w_cat = w_cat.astype(compute_dtype)
    out_dtype = out_dtype or x.dtype

    # --- M tiling: no jnp.pad copy; ragged last tile handled by Pallas. ---
    tm = m if m <= tile_m else tile_m          # tile_m is a multiple of 8
    m_tiles = pl.cdiv(m, tm)

    # --- N tiling only when the fused weight can't comfortably sit in VMEM
    #     (matters mostly on v7x with 64 MiB / TC). ---
    w_bytes = k * n2p * jnp.dtype(w_cat.dtype).itemsize
    if w_bytes > weight_resident_bytes and n2p > tile_n:
        tn = tile_n                             # multiple of 256 (MXU friendly)
        n2_grid = ((n2p + tn - 1) // tn) * tn   # keep every N tile lane-dense
        if n2_grid != n2p:
            w_cat = jnp.pad(w_cat, ((0, 0), (0, n2_grid - n2p)))
            n2p = n2_grid
    else:
        tn = n2p
    n_tiles = n2p // tn

    # --- VMEM budget for the actual tiles (+ headroom), explicit limit. ---
    isz_x = jnp.dtype(x2d.dtype).itemsize
    isz_w = jnp.dtype(w_cat.dtype).itemsize
    isz_o = jnp.dtype(out_dtype).itemsize
    w_bufs = 1 if n_tiles == 1 else 2
    needed = (2 * tm * k * isz_x + w_bufs * k * tn * isz_w + 2 * tm * tn * isz_o)
    vmem_limit = min(max(int(needed * 1.5) + (4 << 20), 32 << 20), 100 << 20)

    cost = pl.CostEstimate(
        flops=2 * m * k * n2p,
        transcendentals=0,
        bytes_accessed=m * k * isz_x + k * n2p * isz_w + m * n2p * isz_o,
    )

    out2d = pl.pallas_call(
        _fourier_kernel,
        out_shape=jax.ShapeDtypeStruct((m, n2p), out_dtype),
        grid_spec=pltpu.PrefetchScalarGridSpec(
            num_scalar_prefetch=0,
            grid=(m_tiles, n_tiles),
            in_specs=[
                # x: one (tm, K) tile per M step; resident across the inner N
                # axis (block index independent of j). Double-buffered.
                pl.BlockSpec((tm, input_dim), lambda i, j: (i, 0)),
                # fused weight: resident (single-buffered) when n_tiles == 1,
                # else streamed (K, tn) slabs.
                _weight_spec(input_dim, tn, n_tiles),
            ],
            out_specs=pl.BlockSpec((tm, tn), lambda i, j: (i, j)),
        ),
        compiler_params=pltpu.CompilerParams(
            # Independent output tiles on both axes. Plain "parallel" is
            # neutral on single-TC v5e/v6e and lets Mosaic shard M across the
            # two v7x TensorCores.
            dimension_semantics=("parallel", "parallel"),
            vmem_limit_bytes=vmem_limit,
        ),
        cost_estimate=cost,
    )(x2d, w_cat)

    if n2p != n2:
        out2d = out2d[:, :n2]   # drop the lane-padding columns (zeros)
    return out2d.reshape(batch, seq, n2)


def nonparametric_fourier_layer(x, weight_real, weight_imag, **kwargs):
    """Convenience entry point taking the raw (output_dim, K) nn.Parameters."""
    compute_dtype = kwargs.get("compute_dtype", None)
    w_cat = fuse_fourier_weights(weight_real, weight_imag,
                                 compute_dtype=compute_dtype)
    return nonparametric_fourier_layer_fused(
        x, w_cat, weight_real.shape[0], **kwargs)


def _reference(x, weight_real, weight_imag):
    real = jnp.einsum("bsk,nk->bsn", x, weight_real)
    imag = jnp.einsum("bsk,nk->bsn", x, weight_imag)
    return jnp.concatenate([real, imag], axis=-1)


if __name__ == "__main__":
    key = jax.random.PRNGKey(0)
    kx, kr, ki, kx2 = jax.random.split(key, 4)

    # --- Test 1: tiny shapes from the module's forward (single tile). ---
    batch, seq, input_dim, output_dim = 2, 8, 32, 16
    x = jax.random.normal(kx, (batch, seq, input_dim), dtype=jnp.float32)
    weight_real = jax.random.normal(kr, (output_dim, input_dim), dtype=jnp.float32)
    weight_imag = jax.random.normal(ki, (output_dim, input_dim), dtype=jnp.float32)

    out = nonparametric_fourier_layer(x, weight_real, weight_imag)
    out = jax.block_until_ready(out)
    ref = _reference(x, weight_real, weight_imag)
    assert out.shape == (batch, seq, 2 * output_dim), out.shape
    assert jnp.allclose(out, ref, atol=1e-4, rtol=1e-4), "mismatch vs reference"

    # --- Test 2: multi-tile M with a ragged last tile (no pad copy), using the
    #     pre-fused-weight entry point. ---
    batch2, seq2 = 4, 300                       # m = 1200 = 9*128 + 48 (ragged)
    x2 = jax.random.normal(kx2, (batch2, seq2, input_dim), dtype=jnp.float32)
    w_cat = fuse_fourier_weights(weight_real, weight_imag)
    out2 = nonparametric_fourier_layer_fused(x2, w_cat, output_dim, tile_m=128)
    out2 = jax.block_until_ready(out2)
    ref2 = _reference(x2, weight_real, weight_imag)
    assert out2.shape == (batch2, seq2, 2 * output_dim), out2.shape
    assert jnp.allclose(out2, ref2, atol=1e-4, rtol=1e-4), "ragged-tile mismatch"

    # --- Test 3: opt-in bf16 compute path (f32 accumulation, f32 output). ---
    out_bf16 = nonparametric_fourier_layer(
        x, weight_real, weight_imag, compute_dtype=jnp.bfloat16)
    out_bf16 = jax.block_until_ready(out_bf16)
    assert out_bf16.shape == (batch, seq, 2 * output_dim), out_bf16.shape
    assert float(jnp.max(jnp.abs(out_bf16.astype(jnp.float32) - ref))) < 0.5

    print("KERNEL_OK")
</pallas_src>

<mosaic_0001>
module attributes {stable_mosaic.version = 11 : i64} {
  func.func @_fourier_kernel(%arg0: i32, %arg1: i32, %arg2: memref<16x32xf32, #tpu.memory_space<vmem>>, %arg3: memref<32x128xf32, #tpu.memory_space<vmem>>, %arg4: memref<16x128xf32, #tpu.memory_space<vmem>>) attributes {dimension_semantics = [#tpu.dimension_semantics<parallel>, #tpu.dimension_semantics<parallel>], iteration_bounds = array<i64: 1, 1>, scalar_prefetch = 0 : i64, scratch_operands = 0 : i64, tpu.core_type = #tpu.core_type<tc>, window_params = [{transform_indices = @transform_0, window_bounds = array<i64: 16, 32>}, {pipeline_mode = #tpu.pipeline_mode<synchronous>, transform_indices = @transform_1, window_bounds = array<i64: 32, 128>}, {transform_indices = @transform_2, window_bounds = array<i64: 16, 128>}]} {
    %c0 = arith.constant 0 : index
    %c0_0 = arith.constant 0 : index
    %0 = vector.load %arg2[%c0, %c0_0] : memref<16x32xf32, #tpu.memory_space<vmem>>, vector<16x32xf32>
    %c0_1 = arith.constant 0 : index
    %c0_2 = arith.constant 0 : index
    %1 = vector.load %arg3[%c0_1, %c0_2] : memref<32x128xf32, #tpu.memory_space<vmem>>, vector<32x128xf32>
    %cst = arith.constant dense<0.000000e+00> : vector<16x128xf32>
    %2 = tpu.matmul %0, %1, %cst {dimension_numbers = #tpu.dot_dimension_numbers<[1], [0], [0], [1], [0, 0, 1, 1], [], []>} : vector<16x32xf32>, vector<32x128xf32>, vector<16x128xf32> -> vector<16x128xf32>
    %c0_3 = arith.constant 0 : index
    %c0_4 = arith.constant 0 : index
    %3 = vector.load %arg4[%c0_3, %c0_4] : memref<16x128xf32, #tpu.memory_space<vmem>>, vector<16x128xf32>
    tpu.vector_store %arg4[%c0_3, %c0_4], %2 {strides = array<i32>} : memref<16x128xf32, #tpu.memory_space<vmem>>, vector<16x128xf32>,
    return
  }
  func.func @transform_0(%arg0: i32, %arg1: i32) -> (i32, i32) {
    %c0_i32 = arith.constant 0 : i32
    %c0_i32_0 = arith.constant 0 : i32
    return %arg0, %c0_i32 : i32, i32
  }
  func.func @transform_1(%arg0: i32, %arg1: i32) -> (i32, i32) {
    %c0_i32 = arith.constant 0 : i32
    %c0_i32_0 = arith.constant 0 : i32
    return %c0_i32, %arg1 : i32, i32
  }
  func.func @transform_2(%arg0: i32, %arg1: i32) -> (i32, i32) {
    %c0_i32 = arith.constant 0 : i32
    return %arg0, %arg1 : i32, i32
  }
}

</mosaic_0001>

<bundles_post_ra>
// kernel: tpu_custom_call.1
= control target key start
LH: loop header
LB: loop body
LE: loop exit
PB: predicated region body
PF: predicated region fallthrough
CT: control target
= control target key end

     0   :  { %7 = vsyncpa [#allocation3], 0  ;;  %s229_s0 = inlined_call_operand.hbm [shape: f32[16,32], index: 0, kind: input, shape index: {}]   ;;  %s230_s1 = inlined_call_operand.hbm [shape: f32[32,128], index: 1, kind: input, shape index: {}]   ;;  %s231_s2 = inlined_call_operand.hbm [shape: f32[16,128], index: 2, kind: output, shape index: {}]  }
   0x1   :  { %8 = vsyncpa [#allocation6], 0 }
   0x2   :  { %9 = vsyncpa [#allocation4], 0  ;;  %s14_s11 = sshll.u32 %s229_s0, 4  ;;  %s191_s12 = smov [#allocation2]   ;;  %s15_s11 = int_to_ptr.hbm [resolvable:$true] %s14_s11 }
   0x3   :  { %s16_s13 = sshll.u32 %s191_s12, 4  ;;  %s27_s16 = sshll.u32 %s230_s1, 4  ;;  %s17_s13 = int_to_ptr.vmem [resolvable:$true] %s16_s13  ;;  %s28_s16 = int_to_ptr.hbm [resolvable:$true] %s27_s16 }
   0x4   :  { %s192_s17 = smov 128   ;;  %s193_s18 = smov 8  }
   0x5   :  { %22 = dma.hbm_to_vmem [thread:$0]  %s15_s11, 256, %s17_s13, [#allocation3], %s192_s17, %s192_s17, %s193_s18  }
   0x6   :  { %s194_s19 = smov [#allocation5]  }
   0x7   :  { %s29_s20 = sshll.u32 %s194_s19, 4  ;;  %s30_s20 = int_to_ptr.vmem [resolvable:$true] %s29_s20 }
   0x8   :  { %35 = dma.hbm_to_vmem [thread:$0]  %s28_s16, 512, %s30_s20, [#allocation6], %s192_s17, %s192_s17, %s193_s18  }
   0x9   :  { %185 = dma.done.wait [#allocation3], 256  }
   0xa   :  { %186 = vsyncadd [#allocation3], 4294967040 }
   0xb   :  { %187 = dma.done.wait [#allocation6], 512  }
   0xc   :  { %188 = vsyncadd [#allocation6], 4294966784  ;;  %v49_v0 = vld [vmem:[#allocation5 + $0x18] sm:$0xff]  ;;  %v48_v1 = vld [vmem:[#allocation5 + $0x10] sm:$0xff]  ;;  %vm50_vm0 = vcmask 261120   ;;  %s195_s0 = smov [#allocation7]  }
   0xd   :  { %69 = vmatpush.msra.mxu0 %v49_v0  ;;  %104 = vmatpush.msra.mxu1 %v49_v0  ;;  %v47_v2 = vld [vmem:[#allocation5 + $0x8] sm:$0xff]  ;;  %v46_v3 = vld [vmem:[#allocation5] sm:$0xff]  ;;  %v44_v4 = vld [vmem:[#allocation2] sm:$0xff]  ;;  %s86_s1 = sshll.u32 %s195_s0, 4  ;;  %s88_s23 = sshll.u32 %s231_s2, 4  ;;  %s87_s1 = int_to_ptr.vmem [resolvable:$true] %s86_s1  ;;  %s89_s23 = int_to_ptr.hbm [resolvable:$true] %s88_s23 }
   0xe   :  { %v45_v5 = vld [vmem:[#allocation2 + $0x8] sm:$0xff] }
   0xf   :  { %70 = vmatpush.msra.mxu0 %v48_v1  ;;  %105 = vmatpush.msra.mxu1 %v48_v1 }
  0x11   :  { %71 = vmatpush.msra.mxu0 %v47_v2  ;;  %106 = vmatpush.msra.mxu1 %v47_v2 }
  0x13   :  { %72 = vmatpush.msra.mxu0 %v46_v3  ;;  %107 = vmatpush.msra.mxu1 %v46_v3 }
  0x14   :  { %102 = vmatmul.msk.f32.vlgmr.msra.gmra.mxu0 %vm50_vm0, %v44_v4  ;;  %103 = vmatmul.msk.f32.vlgmr.msra.gmra.mxu1 %vm50_vm0, %v45_v5 }
  0x91   :  { %v74_v6 = vpop.f32.mrf.mxu0  ;;  %v77_v7 = vpop.f32.mrf.mxu1 }
  0x92   :  { %80 = vst [vmem:[#allocation7] sm:$0xff] %v74_v6 }
  0x93   :  { %81 = vst [vmem:[#allocation7 + $0x8] sm:$0xff] %v77_v7 }
  0x94   :  { %94 = dma.vmem_to_hbm [thread:$0]  %s87_s1, 256, %s89_s23, [#allocation4], %s192_s17, %s192_s17, %s193_s18  }
  0x95   :  { %189 = dma.done.wait [#allocation4], 256  }
  0x96   :  { %190 = vsyncadd [#allocation4], 4294967040 }
  0x97   :  { %99 = vsyncpa [#allocation3], 1 }
  0x98   :  { %100 = vsyncpa [#allocation6], 1 }
  0x99   :  { %101 = vsyncpa [#allocation4], 1 }

</bundles_post_ra>
